<compile_context>
chip_gen: v7x
topology: tpu7x:2x2x1
jax: 0.10.0
libtpu: 0.0.40
codegen_flags: <defaults>
</compile_context>

<pallas_src>
import jax
import jax.numpy as jnp
from jax.experimental import pallas as pl
from jax.experimental.pallas import tpu as pltpu  # noqa: F401 (TPU backend)

IN_DIM = 16
H1 = 128          # layer 1 width == lane width
H2 = 64           # layer 2 width (zero-padded to 128 lanes inside the kernel)
OUT_DIM = 4
BATCH = 8
LANE = 128
W_ROWS = IN_DIM + H1 + H1       # 272 weight rows in the packed slab
P_ROWS = W_ROWS + 8             # 280 total rows (8 vector rows appended)
EPS = 1e-5                      # PyTorch BatchNorm1d default eps


def small_network_kernel(x_ref, p_ref, o_ref):
    # ---- unpack the single parameter slab (static, sublane-aligned slices) ----
    w1 = p_ref[0:IN_DIM, :]                        # (16, 128)
    w2 = p_ref[IN_DIM:IN_DIM + H1, :]              # (128, 128)  cols 64.. are 0
    w3 = p_ref[IN_DIM + H1:W_ROWS, :]              # (128, 128)  rows 64../cols 4.. are 0

    g1 = p_ref[W_ROWS + 0:W_ROWS + 1, :]           # (1, 128)
    be1 = p_ref[W_ROWS + 1:W_ROWS + 2, :]          # (1, 128)
    g2 = p_ref[W_ROWS + 2:W_ROWS + 3, :]           # (1, 128)  cols 64.. are 0
    be2 = p_ref[W_ROWS + 3:W_ROWS + 4, :]          # (1, 128)  cols 64.. are 0
    b3 = p_ref[W_ROWS + 4:W_ROWS + 5, :]           # (1, 128)  cols 4..  are 0

    x = x_ref[...]                                 # (8, 16)
    inv_b = 1.0 / x.shape[0]                       # static scalar

    # ---- Linear 1 (bias dropped: cancelled by BN mean) + folded BN + ReLU ----
    h = jnp.dot(x, w1, preferred_element_type=jnp.float32)        # (8, 128)
    mu = jnp.sum(h, axis=0, keepdims=True) * inv_b                # single-pass stats:
    msq = jnp.sum(h * h, axis=0, keepdims=True) * inv_b           # two independent XLU reduces
    var = jnp.maximum(msq - mu * mu, 0.0)                         # biased var (train-mode)
    s = g1 * jax.lax.rsqrt(var + EPS)                             # rsqrt -> EUP slot
    t = be1 - mu * s
    h = jnp.maximum(h * s + t, 0.0)

    # ---- Linear 2 + folded BN + ReLU (lane-padded: cols 64.. stay exactly 0) ----
    h = jnp.dot(h, w2, preferred_element_type=jnp.float32)        # (8, 128)
    mu = jnp.sum(h, axis=0, keepdims=True) * inv_b
    msq = jnp.sum(h * h, axis=0, keepdims=True) * inv_b
    var = jnp.maximum(msq - mu * mu, 0.0)
    s = g2 * jax.lax.rsqrt(var + EPS)
    t = be2 - mu * s
    h = jnp.maximum(h * s + t, 0.0)

    # ---- Linear 3 (lane-dense (8,128) store; real output is cols 0..3) ----
    o_ref[...] = (jnp.dot(h, w3, preferred_element_type=jnp.float32) + b3
                  ).astype(o_ref.dtype)
    # TODO(synk): BatchNorm running_mean/running_var updates (training-mode side
    # effect) and the eval-mode (running-stat) path are not materialized; only
    # the train-mode forward activation is produced.


def _small_network_impl(x, p_packed):
    out_padded = pl.pallas_call(
        small_network_kernel,
        out_shape=jax.ShapeDtypeStruct((x.shape[0], LANE), jnp.float32),
        # No grid, no BlockSpecs: single invocation, whole (tiny) arrays land in
        # VMEM once, no double-buffering machinery -> 2 input DMAs total.
    )(x, p_packed)
    return out_padded[:, :OUT_DIM]


# One executable: pallas_call + trailing slice dispatch together.
small_network = jax.jit(_small_network_impl)


def init_params(key):
    k1, k2, k3 = jax.random.split(key, 3)
    # Deterministic synthetic init (PyTorch-like scale); BN gamma=1, beta=0.
    w1 = jax.random.normal(k1, (IN_DIM, H1), jnp.float32) * (1.0 / jnp.sqrt(IN_DIM))
    b1 = jnp.full((1, H1), 0.01, jnp.float32)
    g1 = jnp.ones((1, H1), jnp.float32)
    be1 = jnp.zeros((1, H1), jnp.float32)

    w2 = jax.random.normal(k2, (H1, H2), jnp.float32) * (1.0 / jnp.sqrt(H1))
    b2 = jnp.full((1, H2), 0.01, jnp.float32)
    g2 = jnp.ones((1, H2), jnp.float32)
    be2 = jnp.zeros((1, H2), jnp.float32)

    w3 = jax.random.normal(k3, (H2, OUT_DIM), jnp.float32) * (1.0 / jnp.sqrt(H2))
    b3 = jnp.full((1, OUT_DIM), 0.01, jnp.float32)
    return (w1, b1, g1, be1, w2, b2, g2, be2, w3, b3)


def pack_params(params):
    """One-time packing of ALL model parameters into one contiguous (280,128) slab.

    NOTE: the padded lanes (cols 64.. of w2/g2/beta2, rows 64.. / cols 4.. of
    w3, cols 4.. of b3) must be exactly 0.0 for the lane-padded compute inside
    the kernel to be correct.
    """
    w1, b1, g1, be1, w2, b2, g2, be2, w3, b3 = params
    del b1, b2  # biases before BatchNorm are cancelled by the mean subtraction

    w2p = jnp.zeros((H1, LANE), jnp.float32).at[:, :H2].set(w2)
    w3p = jnp.zeros((H1, LANE), jnp.float32).at[:H2, :OUT_DIM].set(w3)

    v = jnp.zeros((8, LANE), jnp.float32)
    v = v.at[0, :].set(g1.reshape(-1))
    v = v.at[1, :].set(be1.reshape(-1))
    v = v.at[2, :H2].set(g2.reshape(-1))
    v = v.at[3, :H2].set(be2.reshape(-1))
    v = v.at[4, :OUT_DIM].set(b3.reshape(-1))

    p_packed = jnp.concatenate([w1, w2p, w3p, v], axis=0)     # (280, 128)
    assert p_packed.shape == (P_ROWS, LANE)
    return p_packed


def reference(x, params):
    """Pure-JAX reference of the PyTorch train-mode forward (with b1/b2)."""
    w1, b1, g1, be1, w2, b2, g2, be2, w3, b3 = params
    h = x @ w1 + b1
    mu = h.mean(0, keepdims=True)
    var = ((h - mu) ** 2).mean(0, keepdims=True)
    h = jnp.maximum((h - mu) / jnp.sqrt(var + EPS) * g1 + be1, 0.0)
    h = h @ w2 + b2
    mu = h.mean(0, keepdims=True)
    var = ((h - mu) ** 2).mean(0, keepdims=True)
    h = jnp.maximum((h - mu) / jnp.sqrt(var + EPS) * g2 + be2, 0.0)
    return h @ w3 + b3


if __name__ == "__main__":
    key = jax.random.PRNGKey(0)
    kx, kp = jax.random.split(key)
    x = jax.random.normal(kx, (BATCH, IN_DIM), jnp.float32)
    params = init_params(kp)
    p_packed = pack_params(params)

    out = small_network(x, p_packed)
    out = jax.block_until_ready(out)
    assert out.shape == (BATCH, OUT_DIM)
    assert jnp.all(jnp.isfinite(out))

    ref = reference(x, params)
    assert jnp.allclose(out, ref, atol=1e-4, rtol=1e-4), float(
        jnp.max(jnp.abs(out - ref)))
    print("KERNEL_OK")
</pallas_src>

<mosaic_0001>
module attributes {stable_mosaic.version = 11 : i64} {
  func.func @small_network_kernel(%arg0: memref<8x16xf32, #tpu.memory_space<vmem>>, %arg1: memref<280x128xf32, #tpu.memory_space<vmem>>, %arg2: memref<8x128xf32, #tpu.memory_space<vmem>>) attributes {dimension_semantics = [], scalar_prefetch = 0 : i64, scratch_operands = 0 : i64, tpu.core_type = #tpu.core_type<tc>} {
    %c0 = arith.constant 0 : index
    %c0_0 = arith.constant 0 : index
    %0 = vector.load %arg1[%c0, %c0_0] : memref<280x128xf32, #tpu.memory_space<vmem>>, vector<16x128xf32>
    %c16 = arith.constant 16 : index
    %c0_1 = arith.constant 0 : index
    %1 = vector.load %arg1[%c16, %c0_1] : memref<280x128xf32, #tpu.memory_space<vmem>>, vector<128x128xf32>
    %c144 = arith.constant 144 : index
    %c0_2 = arith.constant 0 : index
    %2 = vector.load %arg1[%c144, %c0_2] : memref<280x128xf32, #tpu.memory_space<vmem>>, vector<128x128xf32>
    %c272 = arith.constant 272 : index
    %c0_3 = arith.constant 0 : index
    %3 = vector.load %arg1[%c272, %c0_3] : memref<280x128xf32, #tpu.memory_space<vmem>>, vector<1x128xf32>
    %c273 = arith.constant 273 : index
    %c0_4 = arith.constant 0 : index
    %4 = vector.load %arg1[%c273, %c0_4] : memref<280x128xf32, #tpu.memory_space<vmem>>, vector<1x128xf32>
    %c274 = arith.constant 274 : index
    %c0_5 = arith.constant 0 : index
    %5 = vector.load %arg1[%c274, %c0_5] : memref<280x128xf32, #tpu.memory_space<vmem>>, vector<1x128xf32>
    %c275 = arith.constant 275 : index
    %c0_6 = arith.constant 0 : index
    %6 = vector.load %arg1[%c275, %c0_6] : memref<280x128xf32, #tpu.memory_space<vmem>>, vector<1x128xf32>
    %c276 = arith.constant 276 : index
    %c0_7 = arith.constant 0 : index
    %7 = vector.load %arg1[%c276, %c0_7] : memref<280x128xf32, #tpu.memory_space<vmem>>, vector<1x128xf32>
    %c0_8 = arith.constant 0 : index
    %c0_9 = arith.constant 0 : index
    %8 = vector.load %arg0[%c0_8, %c0_9] : memref<8x16xf32, #tpu.memory_space<vmem>>, vector<8x16xf32>
    %cst = arith.constant dense<0.000000e+00> : vector<8x128xf32>
    %9 = tpu.matmul %8, %0, %cst {dimension_numbers = #tpu.dot_dimension_numbers<[1], [0], [0], [1], [0, 0, 1, 1], [], []>} : vector<8x16xf32>, vector<16x128xf32>, vector<8x128xf32> -> vector<8x128xf32>
    %cst_10 = arith.constant dense<0.000000e+00> : vector<128xf32>
    %10 = vector.multi_reduction <add>, %9, %cst_10 [0] : vector<8x128xf32> to vector<128xf32>
    %11 = vector.shape_cast %10 : vector<128xf32> to vector<1x128xf32>
    %cst_11 = arith.constant 1.250000e-01 : f32
    %12 = vector.broadcast %cst_11 : f32 to vector<1x128xf32>
    %13 = arith.mulf %11, %12 : vector<1x128xf32>
    %14 = arith.mulf %9, %9 : vector<8x128xf32>
    %cst_12 = arith.constant dense<0.000000e+00> : vector<128xf32>
    %15 = vector.multi_reduction <add>, %14, %cst_12 [0] : vector<8x128xf32> to vector<128xf32>
    %16 = vector.shape_cast %15 : vector<128xf32> to vector<1x128xf32>
    %cst_13 = arith.constant 1.250000e-01 : f32
    %17 = vector.broadcast %cst_13 : f32 to vector<1x128xf32>
    %18 = arith.mulf %16, %17 : vector<1x128xf32>
    %19 = arith.mulf %13, %13 : vector<1x128xf32>
    %20 = arith.subf %18, %19 : vector<1x128xf32>
    %cst_14 = arith.constant 0.000000e+00 : f32
    %21 = vector.broadcast %cst_14 : f32 to vector<1x128xf32>
    %22 = arith.maximumf %20, %21 : vector<1x128xf32>
    %cst_15 = arith.constant 9.99999974E-6 : f32
    %23 = vector.broadcast %cst_15 : f32 to vector<1x128xf32>
    %24 = arith.addf %22, %23 : vector<1x128xf32>
    %25 = math.rsqrt %24 : vector<1x128xf32>
    %26 = arith.mulf %3, %25 : vector<1x128xf32>
    %27 = arith.mulf %13, %26 : vector<1x128xf32>
    %28 = arith.subf %4, %27 : vector<1x128xf32>
    %29 = vector.broadcast %26 : vector<1x128xf32> to vector<8x128xf32>
    %30 = arith.mulf %9, %29 : vector<8x128xf32>
    %31 = vector.broadcast %28 : vector<1x128xf32> to vector<8x128xf32>
    %32 = arith.addf %30, %31 : vector<8x128xf32>
    %cst_16 = arith.constant 0.000000e+00 : f32
    %33 = vector.broadcast %cst_16 : f32 to vector<8x128xf32>
    %34 = arith.maximumf %32, %33 : vector<8x128xf32>
    %cst_17 = arith.constant dense<0.000000e+00> : vector<8x128xf32>
    %35 = tpu.matmul %34, %1, %cst_17 {dimension_numbers = #tpu.dot_dimension_numbers<[1], [0], [0], [1], [0, 0, 1, 1], [], []>} : vector<8x128xf32>, vector<128x128xf32>, vector<8x128xf32> -> vector<8x128xf32>
    %cst_18 = arith.constant dense<0.000000e+00> : vector<128xf32>
    %36 = vector.multi_reduction <add>, %35, %cst_18 [0] : vector<8x128xf32> to vector<128xf32>
    %37 = vector.shape_cast %36 : vector<128xf32> to vector<1x128xf32>
    %cst_19 = arith.constant 1.250000e-01 : f32
    %38 = vector.broadcast %cst_19 : f32 to vector<1x128xf32>
    %39 = arith.mulf %37, %38 : vector<1x128xf32>
    %40 = arith.mulf %35, %35 : vector<8x128xf32>
    %cst_20 = arith.constant dense<0.000000e+00> : vector<128xf32>
    %41 = vector.multi_reduction <add>, %40, %cst_20 [0] : vector<8x128xf32> to vector<128xf32>
    %42 = vector.shape_cast %41 : vector<128xf32> to vector<1x128xf32>
    %cst_21 = arith.constant 1.250000e-01 : f32
    %43 = vector.broadcast %cst_21 : f32 to vector<1x128xf32>
    %44 = arith.mulf %42, %43 : vector<1x128xf32>
    %45 = arith.mulf %39, %39 : vector<1x128xf32>
    %46 = arith.subf %44, %45 : vector<1x128xf32>
    %cst_22 = arith.constant 0.000000e+00 : f32
    %47 = vector.broadcast %cst_22 : f32 to vector<1x128xf32>
    %48 = arith.maximumf %46, %47 : vector<1x128xf32>
    %cst_23 = arith.constant 9.99999974E-6 : f32
    %49 = vector.broadcast %cst_23 : f32 to vector<1x128xf32>
    %50 = arith.addf %48, %49 : vector<1x128xf32>
    %51 = math.rsqrt %50 : vector<1x128xf32>
    %52 = arith.mulf %5, %51 : vector<1x128xf32>
    %53 = arith.mulf %39, %52 : vector<1x128xf32>
    %54 = arith.subf %6, %53 : vector<1x128xf32>
    %55 = vector.broadcast %52 : vector<1x128xf32> to vector<8x128xf32>
    %56 = arith.mulf %35, %55 : vector<8x128xf32>
    %57 = vector.broadcast %54 : vector<1x128xf32> to vector<8x128xf32>
    %58 = arith.addf %56, %57 : vector<8x128xf32>
    %cst_24 = arith.constant 0.000000e+00 : f32
    %59 = vector.broadcast %cst_24 : f32 to vector<8x128xf32>
    %60 = arith.maximumf %58, %59 : vector<8x128xf32>
    %cst_25 = arith.constant dense<0.000000e+00> : vector<8x128xf32>
    %61 = tpu.matmul %60, %2, %cst_25 {dimension_numbers = #tpu.dot_dimension_numbers<[1], [0], [0], [1], [0, 0, 1, 1], [], []>} : vector<8x128xf32>, vector<128x128xf32>, vector<8x128xf32> -> vector<8x128xf32>
    %62 = vector.broadcast %7 : vector<1x128xf32> to vector<8x128xf32>
    %63 = arith.addf %61, %62 : vector<8x128xf32>
    %c0_26 = arith.constant 0 : index
    %c0_27 = arith.constant 0 : index
    %64 = vector.load %arg2[%c0_26, %c0_27] : memref<8x128xf32, #tpu.memory_space<vmem>>, vector<8x128xf32>
    tpu.vector_store %arg2[%c0_26, %c0_27], %63 {strides = array<i32>} : memref<8x128xf32, #tpu.memory_space<vmem>>, vector<8x128xf32>,
    return
  }
}

</mosaic_0001>

<bundles_post_ra>
// kernel: _small_network_impl.1
= control target key start
LH: loop header
LB: loop body
LE: loop exit
PB: predicated region body
PF: predicated region fallthrough
CT: control target
= control target key end

     0   :  { %7 = vsyncpa [#allocation3], 0  ;;  %s675_s0 = inlined_call_operand.hbm [shape: f32[8,16], index: 0, kind: input, shape index: {}]   ;;  %s676_s1 = inlined_call_operand.hbm [shape: f32[280,128], index: 1, kind: input, shape index: {}]   ;;  %s677_s2 = inlined_call_operand.vmem [shape: f32[8,128], index: 2, kind: output, shape index: {}]  }
   0x1   :  { %8 = vsyncpa [#allocation5], 0  ;;  %s596_s9 = smov [#allocation2]   ;;  %s597_s11 = smov [#allocation4]  }
   0x2   :  { %s15_s10 = sshll.u32 %s596_s9, 4  ;;  %s24_s12 = sshll.u32 %s597_s11, 4  ;;  %s16_s10 = int_to_ptr.vmem [resolvable:$true] %s15_s10  ;;  %s618_s12 = int_to_ptr.vmem [resolvable:$true] %s24_s12 }
   0x3   :  { %s548_s15 = scalar_lea.hbm %s675_s0, 128 }
   0x4   :  { %p549_p0 = scmp.ne.s32.totalorder %s675_s0, %s548_s15  ;;  %p552_p1 = scmp.lt.u32.totalorder %s548_s15, %s675_s0 }
   0x6   :  { %p554_p2 = pnand %p552_p1, %p549_p0 }
   0x8   :  { %557 = shalt.err (!%p554_p2)
}
   0x9   :  { %s558_s20 = scalar_lea.vmem %s16_s10, 128  ;;  %p563_p4 = scmp.lt.s32.totalorder %s16_s10, %s16_s10 }
   0xa   :  { %p559_p3 = scmp.ne.s32.totalorder %s16_s10, %s558_s20  ;;  %p564_p5 = scmp.lt.s32.totalorder %s558_s20, %s558_s20 }
   0xc   :  { %p565_p6 = por %p564_p5, %p563_p4 }
   0xe   :  { %p566_p7 = pnand %p565_p6, %p559_p3 }
  0x10   :  { %569 = shalt.err (!%p566_p7)
}
  0x11   :  { %18 = dma.hbm_to_vmem [thread:$0]  %s675_s0, 128, %s16_s10, [#allocation3]  }
  0x12   :  { %s570_s25 = scalar_lea.hbm %s676_s1, 4480 }
  0x13   :  { %p571_p8 = scmp.ne.s32.totalorder %s676_s1, %s570_s25  ;;  %p574_p9 = scmp.lt.u32.totalorder %s570_s25, %s676_s1 }
  0x15   :  { %p576_p10 = pnand %p574_p9, %p571_p8 }
  0x17   :  { %579 = shalt.err (!%p576_p10)
}
  0x18   :  { %s580_s30 = scalar_lea.vmem %s618_s12, 4480  ;;  %p585_p12 = scmp.lt.s32.totalorder %s618_s12, %s618_s12 }
  0x19   :  { %p581_p11 = scmp.ne.s32.totalorder %s618_s12, %s580_s30  ;;  %p586_p13 = scmp.lt.s32.totalorder %s580_s30, %s580_s30 }
  0x1b   :  { %p587_p0 = por %p586_p13, %p585_p12 }
  0x1d   :  { %p588_p1 = pnand %p587_p0, %p581_p11 }
  0x1f   :  { %591 = shalt.err (!%p588_p1)
}
  0x20   :  { %s598_s0 = smov 128   ;;  %s599_s3 = smov 8  }
  0x21   :  { %30 = dma.hbm_to_vmem [thread:$0]  %s676_s1, 4480, %s618_s12, [#allocation5], %s598_s0, %s598_s0, %s599_s3  }
  0x22   :  { %592 = dma.done.wait [#allocation3], 128  }
  0x23   :  { %593 = vsyncadd [#allocation3], 4294967168 }
  0x24   :  { %594 = dma.done.wait [#allocation5], 4480  }
  0x25   :  { %595 = vsyncadd [#allocation5], 4294962816  ;;  %v600_v0 = vmov 0.0|0.0   ;;  %vm601_vm0 = vmmov 0   ;;  %v602_v1 = vmov 0.0   ;;  %v37_v2 = vld [vmem:[#allocation4] sm:$0xff]  ;;  %v174_v51 = vlaneseq }
  0x26   :  { %486 = vmatprep.subr.bf16.mxu0 %v600_v0  ;;  %413 = vmatprep.mubr.msk.f32.mxu0 %vm601_vm0, %v602_v1  ;;  %v38_v3 = vld [vmem:[#allocation4 + $0x8] sm:$0xff]  ;;  %v76_v5 = vld [vmem:[#allocation2] sm:$0xff]  ;;  %vm77_vm1 = vcmask 130048   ;;  %v39_v6 = vld [vmem:[#allocation4 + $0x10] sm:$0xff] }
  0x27   :  { %489 = vmatprep.subr.bf16.mxu1 %v600_v0  ;;  %448 = vmatprep.mubr.msk.f32.mxu1 %vm601_vm0, %v602_v1  ;;  %v487_v4 = vpack.c.bf16 %v38_v3, %v37_v2  ;;  %v40_v7 = vld [vmem:[#allocation4 + $0x18] sm:$0xff]  ;;  %v41_v9 = vld [vmem:[#allocation4 + $0x20] sm:$0xff]  ;;  %v42_v10 = vld [vmem:[#allocation4 + $0x28] sm:$0xff]  ;;  %v175_v52 = vshrl.u32 %v174_v51, 7 }
  0x28   :  { %v490_v8 = vpack.c.bf16 %v40_v7, %v39_v6  ;;  %v493_v11 = vpack.c.bf16 %v42_v10, %v41_v9  ;;  %v43_v12 = vld [vmem:[#allocation4 + $0x30] sm:$0xff]  ;;  %v44_v13 = vld [vmem:[#allocation4 + $0x38] sm:$0xff]  ;;  %v45_v15 = vld [vmem:[#allocation4 + $0x40] sm:$0xff] }
  0x29   :  { %488 = vmatpush3.bf16.msra.mxu0 %v487_v4  ;;  %v496_v14 = vpack.c.bf16 %v44_v13, %v43_v12  ;;  %v46_v16 = vld [vmem:[#allocation4 + $0x48] sm:$0xff]  ;;  %v47_v18 = vld [vmem:[#allocation4 + $0x50] sm:$0xff]  ;;  %v48_v19 = vld [vmem:[#allocation4 + $0x58] sm:$0xff]  ;;  %v659_v54 = vsub.s32 0, %v175_v52 }
  0x2a   :  { %513 = vmatprep.subr.bf16.mxu0 %v600_v0  ;;  %491 = vmatpush3.bf16.msra.mxu1 %v490_v8  ;;  %v499_v17 = vpack.c.bf16 %v46_v16, %v45_v15  ;;  %v502_v20 = vpack.c.bf16 %v48_v19, %v47_v18  ;;  %v49_v21 = vld [vmem:[#allocation4 + $0x60] sm:$0xff]  ;;  %v50_v22 = vld [vmem:[#allocation4 + $0x68] sm:$0xff]  ;;  %v51_v24 = vld [vmem:[#allocation4 + $0x70] sm:$0xff] }
  0x2b   :  { %492 = vmatprep.subr.bf16.mxu1 %v600_v0  ;;  %v505_v23 = vpack.c.bf16 %v50_v22, %v49_v21  ;;  %v52_v25 = vld [vmem:[#allocation4 + $0x78] sm:$0xff]  ;;  %v53_v27 = vld [vmem:[#allocation4 + $0x80] sm:$0xff]  ;;  %v54_v28 = vld [vmem:[#allocation4 + $0x88] sm:$0xff] }
  0x2c   :  { %414 = vmatmul.mubr.msk.f32.vlgmr.msra.gmra.mrb[0].mxu0 %vm77_vm1, %v76_v5  ;;  %v508_v26 = vpack.c.bf16 %v52_v25, %v51_v24  ;;  %v511_v29 = vpack.c.bf16 %v54_v28, %v53_v27  ;;  %v71_v53 = vld [vmem:[#allocation4 + $0x110] sm:$0x1]  ;;  %v72_v57 = vld [vmem:[#allocation4 + $0x111] sm:$0x1]  ;;  %v56_v3 = vld [vmem:[#allocation4 + $0x98] sm:$0xff] }
  0x2d   :  { %483 = vmatprep.mubr.msk.f32.mxu0 %vm601_vm0, %v602_v1  ;;  %v55_v2 = vld [vmem:[#allocation4 + $0x90] sm:$0xff]  ;;  %v57_v5 = vld [vmem:[#allocation4 + $0xa0] sm:$0xff]  ;;  %v58_v6 = vld [vmem:[#allocation4 + $0xa8] sm:$0xff] }
  0x2e   :  { %494 = vmatpush3.bf16.msra.mxu1 %v493_v11  ;;  %v514_v4 = vpack.c.bf16 %v56_v3, %v55_v2  ;;  %v517_v7 = vpack.c.bf16 %v58_v6, %v57_v5  ;;  %v59_v8 = vld [vmem:[#allocation4 + $0xb0] sm:$0xff]  ;;  %v60_v9 = vld [vmem:[#allocation4 + $0xb8] sm:$0xff]  ;;  %v61_v11 = vld [vmem:[#allocation4 + $0xc0] sm:$0xff] }
  0x2f   :  { %495 = vmatprep.subr.bf16.mxu1 %v600_v0  ;;  %v520_v10 = vpack.c.bf16 %v60_v9, %v59_v8  ;;  %v62_v12 = vld [vmem:[#allocation4 + $0xc8] sm:$0xff]  ;;  %v64_v15 = vld [vmem:[#allocation4 + $0xd8] sm:$0xff] }
  0x30   :  { %515 = vmatpush3.bf16.msra.mxu0 %v514_v4  ;;  %v523_v13 = vpack.c.bf16 %v62_v12, %v61_v11  ;;  %v66_v18 = vld [vmem:[#allocation4 + $0xe8] sm:$0xff]  ;;  %v68_v21 = vld [vmem:[#allocation4 + $0xf8] sm:$0xff] }
  0x31   :  { %516 = vmatprep.subr.bf16.mxu0 %v600_v0  ;;  %v70_v24 = vld [vmem:[#allocation4 + $0x108] sm:$0xff] }
  0x32   :  { %497 = vmatpush3.bf16.msra.mxu1 %v496_v14  ;;  %v63_v14 = vld [vmem:[#allocation4 + $0xd0] sm:$0xff] }
  0x33   :  { %498 = vmatprep.subr.bf16.mxu1 %v600_v0  ;;  %v526_v16 = vpack.c.bf16 %v64_v15, %v63_v14 }
  0x34   :  { %518 = vmatpush3.bf16.msra.mxu0 %v517_v7 }
  0x35   :  { %519 = vmatprep.subr.bf16.mxu0 %v600_v0 }
  0x36   :  { %500 = vmatpush3.bf16.msra.mxu1 %v499_v17  ;;  %v65_v17 = vld [vmem:[#allocation4 + $0xe0] sm:$0xff] }
  0x37   :  { %501 = vmatprep.subr.bf16.mxu1 %v600_v0  ;;  %v529_v19 = vpack.c.bf16 %v66_v18, %v65_v17 }
  0x38   :  { %521 = vmatpush3.bf16.msra.mxu0 %v520_v10 }
  0x39   :  { %522 = vmatprep.subr.bf16.mxu0 %v600_v0 }
  0x3a   :  { %503 = vmatpush3.bf16.msra.mxu1 %v502_v20  ;;  %v67_v20 = vld [vmem:[#allocation4 + $0xf0] sm:$0xff] }
  0x3b   :  { %504 = vmatprep.subr.bf16.mxu1 %v600_v0  ;;  %v532_v22 = vpack.c.bf16 %v68_v21, %v67_v20 }
  0x3c   :  { %524 = vmatpush3.bf16.msra.mxu0 %v523_v13 }
  0x3d   :  { %525 = vmatprep.subr.bf16.mxu0 %v600_v0 }
  0x3e   :  { %506 = vmatpush3.bf16.msra.mxu1 %v505_v23  ;;  %v69_v23 = vld [vmem:[#allocation4 + $0x100] sm:$0xff] }
  0x3f   :  { %507 = vmatprep.subr.bf16.mxu1 %v600_v0  ;;  %v535_v25 = vpack.c.bf16 %v70_v24, %v69_v23 }
  0x40   :  { %527 = vmatpush3.bf16.msra.mxu0 %v526_v16 }
  0x41   :  { %528 = vmatprep.subr.bf16.mxu0 %v600_v0 }
  0x42   :  { %509 = vmatpush3.bf16.msra.mxu1 %v508_v26 }
  0x43   :  { %510 = vmatprep.subr.bf16.mxu1 %v600_v0 }
  0x44   :  { %530 = vmatpush3.bf16.msra.mxu0 %v529_v19 }
  0x45   :  { %531 = vmatprep.subr.bf16.mxu0 %v600_v0 }
  0x46   :  { %512 = vmatpush3.bf16.msra.mxu1 %v511_v29 }
  0x48   :  { %533 = vmatpush3.bf16.msra.mxu0 %v532_v22 }
  0x49   :  { %534 = vmatprep.subr.bf16.mxu0 %v600_v0 }
  0x4c   :  { %536 = vmatpush3.bf16.msra.mxu0 %v535_v25 }
  0xff   :  { %v147_v30 = vpop.f32.mrb[0].mxu0 }
 0x100   :  { %v151_v31 = vrot.slane %v147_v30, 4  ;;  %v158_v32 = vmul.f32 %v147_v30, %v147_v30  ;;  %v415_v33 = vpop.f32.mrb[1].mxu0 }
 0x102   :  { %v152_v34 = vadd.f32 %v151_v31, %v147_v30  ;;  %v159_v35 = vrot.slane %v158_v32, 4 }
 0x104   :  { %v153_v36 = vrot.slane %v152_v34, 2  ;;  %v160_v37 = vadd.f32 %v159_v35, %v158_v32 }
 0x106   :  { %v154_v38 = vadd.f32 %v153_v36, %v152_v34  ;;  %v161_v39 = vrot.slane %v160_v37, 2 }
 0x108   :  { %v155_v40 = vrot.slane %v154_v38, 1  ;;  %v162_v41 = vadd.f32 %v161_v39, %v160_v37 }
 0x10a   :  { %v156_v42 = vadd.f32 %v155_v40, %v154_v38  ;;  %v163_v43 = vrot.slane %v162_v41, 1 }
 0x10c   :  { %v157_v44 = vmul.f32 0.125, %v156_v42  ;;  %v164_v45 = vadd.f32 %v163_v43, %v162_v41 }
 0x10e   :  { %v165_v46 = vmul.f32 0.125, %v164_v45  ;;  %v166_v47 = vmul.f32 %v157_v44, %v157_v44 }
 0x110   :  { %v167_v48 = vsub.f32 %v165_v46, %v166_v47  ;;  %v73_v46 = vld [vmem:[#allocation4 + $0x112] sm:$0x1] }
 0x112   :  { %v168_v49 = vmax.f32 %v167_v48, 0.0 }
 0x114   :  { %v169_v50 = vadd.f32 1e-05, %v168_v49  ;;  %v74_v49 = vld [vmem:[#allocation4 + $0x113] sm:$0x1] }
 0x116   :  { %544 = vrsqrt.f32 %v169_v50 }
 0x120   :  { %v545_v55 = vpop.eup %544 }
 0x121   :  { %v171_v56 = vmul.f32 %v545_v55, %v71_v53 }
 0x123   :  { %v177_v58 = vrot.slane %v171_v56, %v659_v54  ;;  %v172_v59 = vmul.f32 %v171_v56, %v157_v44 }
 0x125   :  { %v173_v60 = vsub.f32 %v72_v57, %v172_v59  ;;  %v178_v61 = vmul.f32 %v177_v58, %v147_v30  ;;  %v371_v58 = vld [vmem:[#allocation4 + $0x114] ss:$0 sm:$0xff] }
 0x127   :  { %v182_v62 = vrot.slane %v173_v60, %v659_v54 }
 0x129   :  { %v183_v63 = vadd.f32 %v182_v62, %v178_v61 }
 0x12b   :  { %v184_v1 = vmax.f32 %v183_v63, 0.0 }
 0x12d   :  { %449 = vmatmul.mubr.f32.vlgmr.msra.gmra.mrb[0].mxu1 %v184_v1 }
 0x200   :  { %v251_v26 = vpop.f32.mrb[0].mxu1 }
 0x201   :  { %v255_v27 = vrot.slane %v251_v26, 4  ;;  %v262_v28 = vmul.f32 %v251_v26, %v251_v26  ;;  %v450_v29 = vpop.f32.mrb[1].mxu1 }
 0x203   :  { %v256_v30 = vadd.f32 %v255_v27, %v251_v26  ;;  %v263_v31 = vrot.slane %v262_v28, 4 }
 0x205   :  { %v257_v32 = vrot.slane %v256_v30, 2  ;;  %v264_v33 = vadd.f32 %v263_v31, %v262_v28 }
 0x207   :  { %v258_v34 = vadd.f32 %v257_v32, %v256_v30  ;;  %v265_v35 = vrot.slane %v264_v33, 2 }
 0x209   :  { %v259_v36 = vrot.slane %v258_v34, 1  ;;  %v266_v37 = vadd.f32 %v265_v35, %v264_v33 }
 0x20b   :  { %v260_v38 = vadd.f32 %v259_v36, %v258_v34  ;;  %v267_v39 = vrot.slane %v266_v37, 1 }
 0x20d   :  { %v261_v40 = vmul.f32 0.125, %v260_v38  ;;  %v268_v0 = vadd.f32 %v267_v39, %v266_v37 }
 0x20f   :  { %v269_v41 = vmul.f32 0.125, %v268_v0  ;;  %v270_v42 = vmul.f32 %v261_v40, %v261_v40 }
 0x211   :  { %v271_v43 = vsub.f32 %v269_v41, %v270_v42 }
 0x213   :  { %v272_v44 = vmax.f32 %v271_v43, 0.0 }
 0x215   :  { %v273_v45 = vadd.f32 1e-05, %v272_v44 }
 0x217   :  { %546 = vrsqrt.f32 %v273_v45 }
 0x221   :  { %v547_v47 = vpop.eup %546 }
 0x222   :  { %v275_v48 = vmul.f32 %v547_v47, %v73_v46 }
 0x224   :  { %v276_v50 = vmul.f32 %v275_v48, %v261_v40  ;;  %v281_v51 = vrot.slane %v275_v48, %v659_v54 }
 0x226   :  { %v277_v52 = vsub.f32 %v74_v49, %v276_v50  ;;  %v282_v53 = vmul.f32 %v281_v51, %v251_v26 }
 0x228   :  { %v286_v55 = vrot.slane %v277_v52, %v659_v54 }
 0x22a   :  { %v287_v56 = vadd.f32 %v286_v55, %v282_v53 }
 0x22c   :  { %v288_v57 = vmax.f32 %v287_v56, 0.0 }
 0x22e   :  { %484 = vmatmul.mubr.f32.vlgmr.msra.gmra.mrb[2].mxu0 %v288_v57 }
 0x301   :  { %v359_v59 = vpop.f32.mrb[2].mxu0 }
 0x302   :  { %v360_v60 = vadd.f32 %v371_v58, %v359_v59  ;;  %v485_v61 = vpop.f32.mrb[3].mxu0 }
 0x304   :  { %363 = vst [vmem:[%s677_s2] sm:$0xff] %v360_v60 }
 0x305   :  { %368 = vsyncpa [#allocation3], 1 }
 0x306   :  { %369 = vsyncpa [#allocation5], 1 }

</bundles_post_ra>
